<compile_context>
chip_gen: v6e
topology: v6e:2x2x1
jax: 0.10.0
libtpu: 0.0.40
codegen_flags: <defaults>
</compile_context>

<pallas_src>
import math

import jax
import jax.numpy as jnp
from jax.experimental import pallas as pl
from jax.experimental.pallas import tpu as pltpu


_TARGET_BLOCK_BYTES = 4 * 1024 * 1024   # ~4 MiB/block
_VMEM_LIMIT_BYTES = 40 * 1024 * 1024    # 2x(in+out) blocks + bias fits easily
_MAX_LANE_FLATTEN = 65536               # cap for L = lcm(C, 128) on the 2D path


def _add_bias_kernel(x_ref, b_ref, o_ref):
    # x_ref: (TR, TC); b_ref: (1, TC) -> plain VPU broadcast add.
    o_ref[...] = (x_ref[...] + b_ref[...]).astype(o_ref.dtype)


def _pick_tiles(rows, cols, in_itemsize, out_itemsize):
    """Block shape (TR, TC): sublane/lane-aligned multiples (or full dims), ~4 MiB."""
    # dtype-native sublane multiple: 8 (f32), 16 (bf16), 32 (int8/fp8)
    sub = max(8, 32 // min(in_itemsize, out_itemsize))
    itemsize = max(in_itemsize, out_itemsize)
    max_elems = max(sub * 128, _TARGET_BLOCK_BYTES // itemsize)

    # Lane tile first: full lane extent when modest, else a big multiple of 128.
    if cols <= max_elems // sub:
        tc = cols
    else:
        tc = max(128, ((max_elems // sub) // 128) * 128)

    # Row tile: fill the remaining budget with a sublane multiple (or full rows).
    rows_budget = max(sub, max_elems // max(tc, 1))
    if rows <= rows_budget:
        tr = rows
        # Megacore (v7x): if everything fits in one block, split rows into >=2
        # blocks so both TensorCores can stream (parallel grid axis).
        if cols == tc and rows >= 2 * sub:
            half = -(-rows // 2)          # ceil(rows / 2)
            tr = -(-half // sub) * sub    # round up to sublane multiple
    else:
        tr = (rows_budget // sub) * sub
    return tr, tc


def _tiled_bias_add(x2d, bias_row, out_dtype):
    """out[r, c] = x2d[r, c] + bias_row[0, c]; bias_row has shape (1, cols)."""
    rows, cols = x2d.shape
    tr, tc = _pick_tiles(rows, cols,
                         x2d.dtype.itemsize, jnp.dtype(out_dtype).itemsize)
    grid = (pl.cdiv(rows, tr), pl.cdiv(cols, tc))

    return pl.pallas_call(
        _add_bias_kernel,
        out_shape=jax.ShapeDtypeStruct((rows, cols), out_dtype),
        grid=grid,
        in_specs=[pl.BlockSpec((tr, tc), lambda i, j: (i, j)),
                  pl.BlockSpec((1, tc), lambda i, j: (0, j))],
        out_specs=pl.BlockSpec((tr, tc), lambda i, j: (i, j)),
        compiler_params=pltpu.CompilerParams(
            dimension_semantics=("parallel", "parallel"),
            vmem_limit_bytes=_VMEM_LIMIT_BYTES,
        ),
    )(x2d, bias_row)


def add_bias(x, bias_param):
    """bias_param has shape (C, 1), exactly like the nn.Parameter in AddBias."""
    c = bias_param.shape[0]
    out_dtype = jnp.promote_types(x.dtype, bias_param.dtype)
    bias_flat = bias_param.reshape(-1).astype(out_dtype)   # (C,)

    if x.ndim == 2:
        n, cx = x.shape
        assert cx == c, "channel mismatch between x and bias"
        if c >= 128:
            # Channels already lane-dense: (N, C) + (1, C).
            return _tiled_bias_add(x, bias_flat.reshape(1, c), out_dtype)
        # Small C: flatten to a lane-dense (rows, L) view, L = lcm(C, 128).
        # This is a contiguous reshape (no extra HBM pass, no transpose).
        lane = (c * 128) // math.gcd(c, 128)
        total = n * c
        if lane <= _MAX_LANE_FLATTEN and total % lane == 0:
            x2 = x.reshape(total // lane, lane)
            brow = jnp.tile(bias_flat, lane // c).reshape(1, lane)
            return _tiled_bias_add(x2, brow, out_dtype).reshape(n, c)
        # Fallback: single-pass masked (N, C) kernel (tiny / ragged cases).
        return _tiled_bias_add(x, bias_flat.reshape(1, c), out_dtype)

    elif x.ndim == 4:
        n, cx, h, w = x.shape
        assert cx == c, "channel mismatch between x and bias"
        # Lane-dense contiguous view: (N, C*H*W) + (1, C*H*W) per-column bias.
        cols = c * h * w
        x2 = x.reshape(n, cols)
        brow = jnp.repeat(bias_flat, h * w).reshape(1, cols)
        return _tiled_bias_add(x2, brow, out_dtype).reshape(n, c, h, w)

    else:
        raise ValueError("AddBias expects 2D (N, C) or 4D (N, C, H, W) input")


if __name__ == "__main__":
    key = jax.random.PRNGKey(0)
    k_bias, k_x2, k_x4, k_bias_big, k_x2_big, k_x2_flat = jax.random.split(key, 6)

    C = 4
    # Deterministic synthetic parameter, shape (C, 1) like bias.unsqueeze(1)
    bias_param = jax.random.normal(k_bias, (C, 1), dtype=jnp.float32)

    # 2D case, tiny N (falls back to single-pass masked (N, C) path): (N, C)
    x2 = jax.random.normal(k_x2, (2, C), dtype=jnp.float32)
    y2 = jax.block_until_ready(add_bias(x2, bias_param))
    ref2 = x2 + bias_param.T.reshape(1, C)

    # 2D case, small C but divisible flatten (lane-dense L=128 path): (64, C)
    x2f = jax.random.normal(k_x2_flat, (64, C), dtype=jnp.float32)
    y2f = jax.block_until_ready(add_bias(x2f, bias_param))
    ref2f = x2f + bias_param.T.reshape(1, C)

    # 4D case: (N, C, H, W), NCHW like PyTorch -> (N, C*H*W) lane-dense view
    x4 = jax.random.normal(k_x4, (2, C, 16, 16), dtype=jnp.float32)
    y4 = jax.block_until_ready(add_bias(x4, bias_param))
    ref4 = x4 + bias_param.T.reshape(1, C, 1, 1)

    # 2D case, large C (already lane-dense path): (N, C_big)
    C_big = 128
    bias_big = jax.random.normal(k_bias_big, (C_big, 1), dtype=jnp.float32)
    x2b = jax.random.normal(k_x2_big, (8, C_big), dtype=jnp.float32)
    y2b = jax.block_until_ready(add_bias(x2b, bias_big))
    ref2b = x2b + bias_big.T.reshape(1, C_big)

    assert y2.shape == x2.shape and y2.dtype == x2.dtype
    assert y2f.shape == x2f.shape and y2f.dtype == x2f.dtype
    assert y4.shape == x4.shape and y4.dtype == x4.dtype
    assert y2b.shape == x2b.shape and y2b.dtype == x2b.dtype
    assert jnp.allclose(y2, ref2, atol=1e-6)
    assert jnp.allclose(y2f, ref2f, atol=1e-6)
    assert jnp.allclose(y4, ref4, atol=1e-6)
    assert jnp.allclose(y2b, ref2b, atol=1e-6)

    print("KERNEL_OK")
</pallas_src>

<mosaic_0001>
module attributes {stable_mosaic.version = 11 : i64} {
  func.func @_add_bias_kernel(%arg0: i32, %arg1: i32, %arg2: memref<2x4xf32, #tpu.memory_space<vmem>>, %arg3: memref<1x4xf32, #tpu.memory_space<vmem>>, %arg4: memref<2x4xf32, #tpu.memory_space<vmem>>) attributes {dimension_semantics = [#tpu.dimension_semantics<parallel>, #tpu.dimension_semantics<parallel>], iteration_bounds = array<i64: 1, 1>, scalar_prefetch = 0 : i64, scratch_operands = 0 : i64, tpu.core_type = #tpu.core_type<tc>, window_params = [{transform_indices = @transform_0, window_bounds = array<i64: 2, 4>}, {transform_indices = @transform_1, window_bounds = array<i64: 1, 4>}, {transform_indices = @transform_2, window_bounds = array<i64: 2, 4>}]} {
    %c0 = arith.constant 0 : index
    %c0_0 = arith.constant 0 : index
    %0 = vector.load %arg2[%c0, %c0_0] : memref<2x4xf32, #tpu.memory_space<vmem>>, vector<2x4xf32>
    %c0_1 = arith.constant 0 : index
    %c0_2 = arith.constant 0 : index
    %1 = vector.load %arg3[%c0_1, %c0_2] : memref<1x4xf32, #tpu.memory_space<vmem>>, vector<1x4xf32>
    %2 = vector.broadcast %1 : vector<1x4xf32> to vector<2x4xf32>
    %3 = arith.addf %0, %2 : vector<2x4xf32>
    %c0_3 = arith.constant 0 : index
    %c0_4 = arith.constant 0 : index
    %4 = vector.load %arg4[%c0_3, %c0_4] : memref<2x4xf32, #tpu.memory_space<vmem>>, vector<2x4xf32>
    tpu.vector_store %arg4[%c0_3, %c0_4], %3 {strides = array<i32>} : memref<2x4xf32, #tpu.memory_space<vmem>>, vector<2x4xf32>,
    return
  }
  func.func @transform_0(%arg0: i32, %arg1: i32) -> (i32, i32) {
    %c0_i32 = arith.constant 0 : i32
    return %arg0, %arg1 : i32, i32
  }
  func.func @transform_1(%arg0: i32, %arg1: i32) -> (i32, i32) {
    %c0_i32 = arith.constant 0 : i32
    %c0_i32_0 = arith.constant 0 : i32
    return %c0_i32, %arg1 : i32, i32
  }
  func.func @transform_2(%arg0: i32, %arg1: i32) -> (i32, i32) {
    %c0_i32 = arith.constant 0 : i32
    return %arg0, %arg1 : i32, i32
  }
}

</mosaic_0001>

<bundles_post_ra>
// kernel: tpu_custom_call.1
= control target key start
LH: loop header
LB: loop body
LE: loop exit
PB: predicated region body
PF: predicated region fallthrough
CT: control target
= control target key end

     0   :  { %7 = vsyncpa [#allocation3], 0  ;;  %s123_s0 = inlined_call_operand.hbm [shape: f32[2,4], index: 0, kind: input, shape index: {}]   ;;  %s124_s1 = inlined_call_operand.vmem [shape: f32[1,4], index: 1, kind: input, shape index: {}]   ;;  %s125_s2 = inlined_call_operand.hbm [shape: f32[2,4], index: 2, kind: output, shape index: {}]  }
   0x1   :  { %8 = vsyncpa [#allocation4], 0  ;;  %s97_s9 = smov [#allocation2]  }
   0x2   :  { %s15_s10 = sshll.u32 %s97_s9, 4  ;;  %s16_s10 = int_to_ptr.vmem [resolvable:$true] %s15_s10 }
   0x3   :  { %s61_s11 = scalar_lea.vmem %s16_s10, 32  ;;  %p66_p1 = scmp.lt.s32.totalorder %s16_s10, %s16_s10 }
   0x4   :  { %p62_p0 = scmp.ne.s32.totalorder %s16_s10, %s61_s11  ;;  %p67_p2 = scmp.lt.s32.totalorder %s61_s11, %s61_s11 }
   0x6   :  { %p68_p3 = por %p67_p2, %p66_p1 }
   0x8   :  { %p69_p4 = pnand %p68_p3, %p62_p0 }
   0xa   :  { %72 = shalt.err (!%p69_p4)
}
   0xb   :  { %18 = dma.hbm_to_vmem [thread:$0]  %s123_s0, 32, %s16_s10, [#allocation3]  }
   0xc   :  { %93 = dma.done.wait [#allocation3], 32  }
   0xd   :  { %94 = vsyncadd [#allocation3], 4294967264  ;;  %s98_s14 = smov [#allocation5]   ;;  %v24_v0 = vld [vmem:[#allocation2] sm:$0x3]  ;;  %vm33_vm0 = vcmask 25600  }
   0xe   :  { %s41_s15 = sshll.u32 %s98_s14, 4  ;;  %v50_v1 = vld [vmem:[%s124_s1] ss:$0 sm:$0xff]  ;;  %s42_s15 = int_to_ptr.vmem [resolvable:$true] %s41_s15 }
   0xf   :  { %v32_v2 = vadd.f32 %v50_v1, %v24_v0  ;;  %s73_s18 = scalar_lea.vmem %s42_s15, 32  ;;  %p78_p6 = scmp.lt.s32.totalorder %s42_s15, %s42_s15 }
  0x10   :  { %p74_p5 = scmp.ne.s32.totalorder %s42_s15, %s73_s18  ;;  %p79_p7 = scmp.lt.s32.totalorder %s73_s18, %s73_s18 }
  0x11   :  { %34 = vst.msk [vmem:[#allocation5] sm:$0x3] %vm33_vm0, %v32_v2 }
  0x12   :  { %p80_p8 = por %p79_p7, %p78_p6 }
  0x14   :  { %p81_p9 = pnand %p80_p8, %p74_p5 }
  0x16   :  { %84 = shalt.err (!%p81_p9)
}
  0x17   :  { %44 = dma.vmem_to_hbm [thread:$0]  %s42_s15, 32, %s125_s2, [#allocation4]  }
  0x18   :  { %95 = dma.done.wait [#allocation4], 32  }
  0x19   :  { %96 = vsyncadd [#allocation4], 4294967264 }
  0x1a   :  { %48 = vsyncpa [#allocation3], 1 }
  0x1b   :  { %49 = vsyncpa [#allocation4], 1 }

</bundles_post_ra>
